<compile_context>
chip_gen: v7x
topology: tpu7x:2x2x1
jax: 0.10.0
libtpu: 0.0.40
codegen_flags: <defaults>
</compile_context>

<pallas_src>
import math

import numpy as np

import jax
import jax.numpy as jnp
from jax.experimental import pallas as pl
from jax.experimental.pallas import tpu as pltpu


def _round_up(x, m):
    return ((x + m - 1) // m) * m


# ----------------------------------------------------------------------------
# Pallas kernel: batched, node-tiled, lane-dense MXU matmul.
#   pos_ref : (1, TN, K)      folded one-hot tree positions (bf16, zero rows = sos/pad)
#   w_ref   : (1, K, D_OUT)   folded block-diagonal tree weights (bf16)
#   out_ref : (1, TN, D_OUT)  f32, D_OUT multiple of 128 -> unmasked stores
# ----------------------------------------------------------------------------
def _tree_pos_matmul_kernel(pos_ref, w_ref, out_ref):
    out_ref[0] = jnp.dot(
        pos_ref[0], w_ref[0], preferred_element_type=jnp.float32
    )


# ----------------------------------------------------------------------------
# VMEM-budgeted tiling helpers.
# ----------------------------------------------------------------------------
def _vmem_capacity_bytes():
    try:
        return int(pltpu.get_tpu_info().vmem_capacity_bytes)
    except Exception:
        return 64 << 20  # conservative fallback (v7x per-TC VMEM)


def _block_vmem_bytes(sublanes, lanes, itemsize):
    # Mosaic pads the last dim to 128 lanes and the 2nd-to-last to the dtype's
    # native sublane tile (8 for f32, 16 for bf16, 32 for int8).
    sub_tile = 8 * max(1, 4 // itemsize)
    return _round_up(sublanes, sub_tile) * _round_up(lanes, 128) * itemsize


def _choose_tile_n(l_fold, k, n_out, budget_bytes):
    """Power-of-two node tile (16..1024) whose double-buffered working set
    (bf16 pos + bf16 W + f32 out blocks, lane/sublane padding included) stays
    under the per-generation VMEM budget."""
    tn = min(1024, max(16, pl.next_power_of_2(max(int(l_fold), 1))))

    def working_set(t):
        return 2 * (
            _block_vmem_bytes(t, k, 2)
            + _block_vmem_bytes(k, n_out, 2)
            + _block_vmem_bytes(t, n_out, 4)
        )

    while tn > 16 and working_set(tn) > budget_bytes:
        tn //= 2
    return tn


def _fold_factor(d_model, wd_pad):
    """Smallest r with r*d_model % 128 == 0 (lane-dense output)."""
    if d_model % 128 == 0:
        return 1
    r = 128 // math.gcd(d_model, 128)
    if r * d_model > 1024 or r * wd_pad > 2048:
        return 1  # folded operands would get too fat; fall back to masked stores
    return r


# ----------------------------------------------------------------------------
# Device-side tree-weight construction from per-sample scalars only.
#   W[b, j, c] = [c // n_feat == j] * tanh(p[c % n_feat])^(j // width)
#                * sqrt((1 - tanh(p)^2) * d_model / 2)        for c < wd*n_feat
# ----------------------------------------------------------------------------
def _build_tree_weights_device(p, widths, wds, n_feats, wd_pad, d_model):
    widths = jnp.asarray(widths, jnp.int32)
    wds = jnp.asarray(wds, jnp.int32)
    n_feats = jnp.asarray(n_feats, jnp.int32)

    cols = jnp.arange(d_model, dtype=jnp.int32)[None, :]            # (1, D)
    nf = n_feats[:, None]                                            # (bs, 1)
    nf_safe = jnp.maximum(nf, 1)
    valid = (nf > 0) & (cols < wds[:, None] * nf)                    # (bs, D)
    feat = jnp.where(valid, cols % nf_safe, 0)
    blk = jnp.where(valid, cols // nf_safe, -1)

    t_all = jnp.tanh(p)
    norm_all = jnp.sqrt((1.0 - t_all * t_all) * (d_model / 2.0))
    tcol = jnp.take(t_all, feat)                                     # (bs, D)
    ncol = jnp.take(norm_all, feat)

    rows = jnp.arange(wd_pad, dtype=jnp.int32)[None, :, None]        # (1, wd_pad, 1)
    m = (rows == blk[:, None, :]).astype(jnp.float32)                # (bs, wd_pad, D)
    dexp = (rows // jnp.maximum(widths, 1)[:, None, None]).astype(jnp.float32)
    return m * jnp.power(tcol[:, None, :], dexp) * ncol[:, None, :]


def _fold_block_diag(w, r):
    """W (bs, K, D) -> block-diagonal kron(eye(r), W) (bs, r*K, r*D)."""
    if r == 1:
        return w
    bs, k, d = w.shape
    eye_r = jnp.eye(r, dtype=w.dtype)
    return (eye_r[None, :, None, :, None] * w[:, None, :, None, :]).reshape(
        bs, r * k, r * d
    )


# ----------------------------------------------------------------------------
# Batched Pallas launch.
# ----------------------------------------------------------------------------
def _tree_pos_signal(pos_fold, w_fold, out_rows, tn, vmem_limit_bytes):
    bs, _, k = pos_fold.shape
    d_out = w_fold.shape[-1]
    grid = (bs, pl.cdiv(out_rows, tn))
    return pl.pallas_call(
        _tree_pos_matmul_kernel,
        out_shape=jax.ShapeDtypeStruct((bs, out_rows, d_out), jnp.float32),
        grid=grid,
        in_specs=[
            pl.BlockSpec((1, tn, k), lambda b, i: (b, i, 0)),
            pl.BlockSpec((1, k, d_out), lambda b, i: (b, 0, 0)),
        ],
        out_specs=pl.BlockSpec((1, tn, d_out), lambda b, i: (b, i, 0)),
        compiler_params=pltpu.CompilerParams(
            dimension_semantics=("parallel", "parallel"),
            vmem_limit_bytes=int(vmem_limit_bytes),
        ),
    )(pos_fold, w_fold)


# ----------------------------------------------------------------------------
# Host-side glue: faithful port of TreePosEnc_for_one_sent's tree/path walk.
# TODO(synk): this data-dependent graph walk (dicts, variable max_width /
# max_depth) has no Pallas equivalent; it stays on host and only emits the
# one-hot position slab plus per-sample scalars (width, wd, n_feat).
# ----------------------------------------------------------------------------
def _build_tree_positions(dp_x, dp_y):
    dp_x = [int(v) for v in dp_x]
    dp_y = [int(v) for v in dp_y]
    fathers = set(dp_x)
    rel_dict = {}
    max_width = 0
    for father in fathers:
        rel_dict[father] = [i for i, x in enumerate(dp_x) if x == father and i != 0]
        max_width = max(max_width, len(rel_dict[father]))
    paths = {}
    for y in dp_y:
        paths[y] = []
        current_path = [y]
        current_node = dp_x[y]
        if current_node not in current_path:
            current_path.append(current_node)
            paths[y].append((y, current_node))
            while current_node != 0:
                y_ = current_node
                current_node = dp_x[y_]
                if current_node not in current_path:
                    current_path.append(current_node)
                    paths[y].append((y_, current_node))
                else:
                    if y_ not in rel_dict[0]:
                        rel_dict[0].append(y_)
                        max_width = max(max_width, len(rel_dict[0]))
                    paths[y].append((y_, 0))
                    break
        else:
            if y not in rel_dict[0] and y != 0:
                rel_dict[0].append(y)
                max_width = max(max_width, len(rel_dict[0]))
            paths[y].append((y, 0))
    paths_ids = {}
    max_depth = 0
    for node, path in paths.items():
        if node != 0:
            paths_ids[node] = []
            for path_node in path:
                paths_ids[node].append(rel_dict[path_node[1]].index(path_node[0]))
            max_depth = max(max_depth, len(paths_ids[node]))
    rows = []
    for node, path in paths_ids.items():
        vec = np.zeros((max_depth, max_width), dtype=np.float32)
        for level, path_id in enumerate(path):
            vec[level, path_id] = 1.0
        rows.append(vec.reshape(-1))
    positions = np.stack(rows, axis=0)[None]  # (1, n_nodes, max_depth*max_width)
    return positions, max_width, max_depth


# ----------------------------------------------------------------------------
# Module wrapper (parameter init + forward, mirrors the PyTorch module).
# ----------------------------------------------------------------------------
class TreePositionalEncodingsPallas:
    def __init__(self, d_model, max_d_tree_param, key):
        self.d_model = d_model
        self.max_d_tree_param = max_d_tree_param
        # torch: self.p.data.uniform_(0.7, 0.999) -- deterministic equivalent:
        self.p = jax.random.uniform(
            key, (max_d_tree_param,), dtype=jnp.float32, minval=0.7, maxval=0.999
        )

    def forward(self, dp_maps, n_dim):
        assert n_dim == self.d_model, "original module concatenates only if n_dim == d_model"
        d_model = self.d_model
        dp_np = np.asarray(dp_maps)  # [bs, 2, max_len]
        bs, _, max_len = dp_np.shape

        # 1) host graph walk per sample (unavoidably host-side).
        samples = []
        wd_max = 1
        for dp_map in dp_np:
            positions_np, width, depth = _build_tree_positions(dp_map[0], dp_map[1])
            samples.append((positions_np, width, depth))
            wd_max = max(wd_max, width * depth)
        # Power-of-two bucket keeps the pallas_call compile cache warm.
        wd_pad = max(8, pl.next_power_of_2(wd_max))

        # 2) lane-dense fold factor and tiling choices.
        r = _fold_factor(d_model, wd_pad)
        l_pad = _round_up(max_len, r)
        l_fold = l_pad // r
        k_fold = r * wd_pad
        d_out = r * d_model

        vmem_cap = _vmem_capacity_bytes()
        vmem_limit = min(vmem_cap * 3 // 4, 96 << 20)      # ~48 MiB on v7x, 96 MiB on v5e/v6e
        tn = _choose_tile_n(l_fold, k_fold, d_out, int(vmem_limit * 0.8))
        # v7x megacore: keep >= 2 grid steps when the work allows it.
        while bs * pl.cdiv(l_fold, tn) < 2 and tn >= 32:
            tn //= 2
        if tn >= l_fold:
            tn = l_fold                                    # single full-extent row block
        rows_pad = _round_up(l_fold, tn)                   # host-padded -> no partial input blocks

        # 3) positions slab on host: rows = [sos(zeros), node one-hots, pad(zeros)],
        #    then folded (free numpy reshape) so r node rows share one lane-dense row.
        pos_np = np.zeros((bs, rows_pad * r, wd_pad), dtype=np.float32)
        widths = np.ones((bs,), np.int32)
        wds = np.zeros((bs,), np.int32)
        n_feats = np.zeros((bs,), np.int32)
        for b, (positions_np, width, depth) in enumerate(samples):
            wd = width * depth
            n_nodes = positions_np.shape[1]
            pos_np[b, 1:1 + n_nodes, :wd] = positions_np[0]
            widths[b] = max(width, 1)
            wds[b] = wd
            n_feat = d_model // wd if wd > 0 else 0
            # TODO(synk): original build_weights emits zeros (via a degenerate branch)
            # when n_feat is 150/300; mirror by zeroing this sample's weights.
            if n_feat in (150, 300):
                n_feat = 0
            n_feats[b] = n_feat
        pos_fold = jnp.asarray(pos_np.reshape(bs, rows_pad, k_fold), dtype=jnp.bfloat16)

        # 4) tree weights rebuilt on device from per-sample scalars only, then
        #    folded into an r-block block-diagonal bf16 matrix.
        w = _build_tree_weights_device(self.p, widths, wds, n_feats, wd_pad, d_model)
        w_fold = _fold_block_diag(w, r).astype(jnp.bfloat16)

        # 5) one batched lane-dense Pallas matmul -> (bs, l_fold, r*d_model), f32.
        out = _tree_pos_signal(pos_fold, w_fold, l_fold, tn, vmem_limit)
        out = out.reshape(bs, l_pad, d_model)              # free row-major unfold
        if l_pad != max_len:
            out = out[:, :max_len, :]                      # only when r doesn't divide max_len
        return out


# ----------------------------------------------------------------------------
# Pure numpy reference (mirrors the PyTorch math) for self-checking.
# ----------------------------------------------------------------------------
def _reference_forward(p, dp_maps_np, d_model, n_dim):
    p = np.asarray(p, dtype=np.float32)
    bs, _, max_len = dp_maps_np.shape
    outs = []
    for dp_map in dp_maps_np:
        positions_np, width, depth = _build_tree_positions(dp_map[0], dp_map[1])
        wd = width * depth
        n_feat = d_model // wd
        n_nodes = positions_np.shape[1]
        full = np.zeros((max_len, n_dim), dtype=np.float32)
        if n_feat >= 1 and n_feat not in (150, 300):
            t = np.tanh(p[:n_feat])
            norm = np.sqrt((1.0 - t * t) * d_model / 2.0)
            depths = np.arange(depth, dtype=np.float32)
            w_dn = (t[None, :] ** depths[:, None]) * norm[None, :]   # (depth, n_feat)
            w_full = np.repeat(w_dn, width, axis=0)                  # (wd, n_feat)
            treeified = (positions_np[0][:, :, None] * w_full[None, :, :]).reshape(
                n_nodes, wd * n_feat
            )
            full[1:1 + n_nodes, : wd * n_feat] = treeified
        outs.append(full)
    return np.stack(outs, axis=0)


if __name__ == "__main__":
    d_model = 32
    max_d_tree_param = 64

    key = jax.random.PRNGKey(0)
    module = TreePositionalEncodingsPallas(d_model, max_d_tree_param, key)

    # dp_maps: [batch=2, 2, max_len=8]
    #   row 0 = dp_x (parent index per token, token 0 is the root)
    #   row 1 = dp_y (node ids to encode)
    dp_maps = jnp.array(
        [
            [[0, 0, 0, 1, 1, 2, 3, 3],
             [1, 2, 3, 4, 5, 6, 7, 0]],
            [[0, 0, 1, 2, 3, 4, 5, 0],
             [1, 2, 3, 4, 5, 6, 0, 0]],
        ],
        dtype=jnp.int32,
    )

    out = module.forward(dp_maps, n_dim=d_model)
    out = jax.block_until_ready(out)
    assert out.shape == (2, 8, d_model), out.shape
    assert out.dtype == jnp.float32, out.dtype
    assert bool(jnp.all(jnp.isfinite(out)))

    # Numerical check vs. the PyTorch-equivalent reference.  Positions are exact
    # one-hots (one weight per output column), so the only error source is the
    # bf16 rounding of W (~0.4% relative) plus MXU accumulate -> loose tolerance.
    ref = _reference_forward(module.p, np.asarray(dp_maps), d_model, d_model)
    assert np.allclose(np.asarray(out), ref, rtol=2e-2, atol=2e-2), (
        float(np.max(np.abs(np.asarray(out) - ref)))
    )
    print("KERNEL_OK")
</pallas_src>

<mosaic_0001>
module attributes {stable_mosaic.version = 11 : i64} {
  func.func @_tree_pos_matmul_kernel(%arg0: i32, %arg1: i32, %arg2: memref<1x2x64xbf16, #tpu.memory_space<vmem>>, %arg3: memref<1x64x128xbf16, #tpu.memory_space<vmem>>, %arg4: memref<1x2x128xf32, #tpu.memory_space<vmem>>) attributes {dimension_semantics = [#tpu.dimension_semantics<parallel>, #tpu.dimension_semantics<parallel>], iteration_bounds = array<i64: 2, 1>, scalar_prefetch = 0 : i64, scratch_operands = 0 : i64, tpu.core_type = #tpu.core_type<tc>, window_params = [{transform_indices = @transform_0, window_bounds = array<i64: 1, 2, 64>}, {transform_indices = @transform_1, window_bounds = array<i64: 1, 64, 128>}, {transform_indices = @transform_2, window_bounds = array<i64: 1, 2, 128>}]} {
    %c0 = arith.constant 0 : index
    %c0_0 = arith.constant 0 : index
    %c0_1 = arith.constant 0 : index
    %0 = vector.load %arg2[%c0, %c0_0, %c0_1] : memref<1x2x64xbf16, #tpu.memory_space<vmem>>, vector<1x2x64xbf16>
    %1 = vector.shape_cast %0 : vector<1x2x64xbf16> to vector<2x64xbf16>
    %c0_2 = arith.constant 0 : index
    %c0_3 = arith.constant 0 : index
    %c0_4 = arith.constant 0 : index
    %2 = vector.load %arg3[%c0_2, %c0_3, %c0_4] : memref<1x64x128xbf16, #tpu.memory_space<vmem>>, vector<1x64x128xbf16>
    %3 = vector.shape_cast %2 : vector<1x64x128xbf16> to vector<64x128xbf16>
    %cst = arith.constant dense<0.000000e+00> : vector<2x128xf32>
    %4 = tpu.matmul %1, %3, %cst {dimension_numbers = #tpu.dot_dimension_numbers<[1], [0], [0], [1], [0, 0, 1, 1], [], []>} : vector<2x64xbf16>, vector<64x128xbf16>, vector<2x128xf32> -> vector<2x128xf32>
    %c0_5 = arith.constant 0 : index
    %c0_6 = arith.constant 0 : index
    %c0_7 = arith.constant 0 : index
    %5 = vector.load %arg4[%c0_5, %c0_6, %c0_7] : memref<1x2x128xf32, #tpu.memory_space<vmem>>, vector<1x2x128xf32>
    %6 = vector.shape_cast %5 : vector<1x2x128xf32> to vector<2x128xf32>
    %7 = vector.shape_cast %4 : vector<2x128xf32> to vector<1x2x128xf32>
    tpu.vector_store %arg4[%c0_5, %c0_6, %c0_7], %7 {strides = array<i32>} : memref<1x2x128xf32, #tpu.memory_space<vmem>>, vector<1x2x128xf32>,
    return
  }
  func.func @transform_0(%arg0: i32, %arg1: i32) -> (i32, i32, i32) {
    %c0_i32 = arith.constant 0 : i32
    %c0_i32_0 = arith.constant 0 : i32
    return %arg0, %arg1, %c0_i32 : i32, i32, i32
  }
  func.func @transform_1(%arg0: i32, %arg1: i32) -> (i32, i32, i32) {
    %c0_i32 = arith.constant 0 : i32
    %c0_i32_0 = arith.constant 0 : i32
    %c0_i32_1 = arith.constant 0 : i32
    return %arg0, %c0_i32, %c0_i32_0 : i32, i32, i32
  }
  func.func @transform_2(%arg0: i32, %arg1: i32) -> (i32, i32, i32) {
    %c0_i32 = arith.constant 0 : i32
    %c0_i32_0 = arith.constant 0 : i32
    return %arg0, %arg1, %c0_i32 : i32, i32, i32
  }
}

</mosaic_0001>

<bundles_post_ra>
// kernel: tpu_custom_call.1
= control target key start
LH: loop header
LB: loop body
LE: loop exit
PB: predicated region body
PF: predicated region fallthrough
CT: control target
= control target key end

     0   :  { %7 = vsyncpa [#allocation3], 0  ;;  %s916_s0 = inlined_call_operand.hbm [shape: bf16[2,2,64], index: 0, kind: input, shape index: {}]   ;;  %s917_s1 = inlined_call_operand.hbm [shape: bf16[2,64,128], index: 1, kind: input, shape index: {}]   ;;  %s918_s2 = inlined_call_operand.hbm [shape: f32[2,2,128], index: 2, kind: output, shape index: {}]  }
   0x1   :  { %9 = vsyncpa [#allocation3 + $0x1], 0 }
   0x2   :  { %10 = vsyncpa [#allocation6], 0 }
   0x3   :  { %12 = vsyncpa [#allocation6 + $0x1], 0 }
   0x4   :  { %13 = vsyncpa [#allocation4], 0 }
   0x5   :  { %15 = vsyncpa [#allocation4 + $0x1], 0  ;;  %s690_s9 = smov 0   ;;  %s692_s10 = smov 0  }
   0x6   :  { %s694_s11 = smov 0   ;;  %s696_s12 = smov 0  }
   0x7   :  { %s698_s13 = smov 0   ;;  %s700_s14 = smov 0  }
   0x8 LB: > { %s407_s15 = sadd.s32 4294967295, %s666_s14   ;;  %s408_s16 = sadd.s32 4294967294, %s666_s14   ;;  %s666_s14 = sphi %s700_s14, %s21_s14   ;;  %s662_s13 = sphi %s698_s13, %s937_s13   ;;  %s658_s12 = sphi %s696_s12, %s936_s12   ;;  %s654_s11 = sphi %s694_s11, %s935_s11   ;;  %s650_s10 = sphi %s692_s10, %s934_s10   ;;  %s646_s9 = sphi %s690_s9, %s933_s9  }
   0x9   : > { %s33_s17 = sadd.s32 1, %s662_s13  ;;  %s42_s18 = sadd.s32 1, %s654_s11 }
   0xa   : > { %p35_p0 = scmp.ge.s32.totalorder %s33_s17, 2  ;;  %p49_p1 = scmp.ne.s32.totalorder %s654_s11, %s650_s10 }
   0xb   : > { %p50_p2 = scmp.eq.s32.totalorder %s666_s14, 0  ;;  %p55_p3 = scmp.ne.s32.totalorder %s650_s10, %s646_s9 }
   0xc   : > { %s939_s17 = smov (%p35_p0, %s33_s17), 0  ;;  %p56_p5 = scmp.eq.s32.totalorder %s407_s15, 0 }
   0xd   : > { %p731_p4 = por %p50_p2, %p49_p1  ;;  %s37_s20 = ssub.s32 %s662_s13, %s939_s17 }
   0xe   : > { %p107_p6 = scmp.eq.s32.totalorder %s407_s15, 1  ;;  %p40_p7 = scmp.eq.s32.totalorder %s37_s20, 0 }
   0xf   : > { %p737_p8 = por %p56_p5, %p55_p3  ;;  %p113_p10 = scmp.eq.s32.totalorder %s408_s16, 1 }
  0x10   : > { %p741_p9 = por %p107_p6, %p49_p1  ;;  %p462_p13 = scmp.lt.s32.totalorder %s666_s14, 2 }
  0x11   : > { %s922_s21 = scalar_select %p737_p8, 1, 0 }
  0x12   : > { %s923_s22 = scalar_select %p741_p9, 1, 0 }
  0x13   : > { %s746_s23 = scalar_select %p40_p7, %s654_s11, %s42_s18  }
  0x14   : > { %p748_p11 = por %p113_p10, %p55_p3  ;;  %s755_s25 = sand.u32 1, %s654_s11  }
  0x15   : > { %s411_s26 = sshll.u32 %s662_s13, 4  ;;  %s136_s27 = scalar_lea.vmem [#allocation2], %s755_s25 }
  0x16   : > { %s924_s24 = scalar_select %p748_p11, 1, 0 }
  0x17   : > { %s144_s28 = sshll.u32 %s136_s27, 4  ;;  %s762_s3 = scalar_lea.hbm %s916_s0, %s411_s26  ;;  %s764_s28 = int_to_ptr.vmem [resolvable:$true] %s144_s28 }
  0x18   : > { %p768_p0 = pnand %p462_p13, %p731_p4  ;;  %s412_s5 = sshll.u32 %s755_s25, 5 }
  0x19   : > { %s134_s6 = scalar_lea.sflag [#allocation3], %s755_s25  ;;  %s520_s7 = scalar_lea.hbm %s762_s3, 16 }
  0x1a   : > { %p521_p3 = scmp.ne.s32.totalorder %s762_s3, %s520_s7  ;;  %p522_p5 = pneg %p768_p0 }
  0x1b   : > { %s525_s16 = scalar_lea.hbm %s916_s0, 32  ;;  %p526_p4 = scmp.lt.u32.totalorder %s762_s3, %s916_s0 }
  0x1c   : > { %p523_p6 = pnand %p522_p5, %p521_p3  ;;  %p527_p10 = scmp.lt.u32.totalorder %s525_s16, %s520_s7 }
  0x1d   : > { %p529_p12 = scmp.lt.u32.totalorder %s520_s7, %s762_s3 }
  0x1e   : > { %p524_p7 = pneg %p523_p6  ;;  %p528_p13 = por %p527_p10, %p526_p4 }
  0x20   : > { %p530_p1 = por %p529_p12, %p528_p13 }
  0x22   : > { %p531_p2 = pnand %p530_p1, %p524_p7 }
  0x24   : > { %534 = shalt.err (!%p531_p2)
}
  0x25   : > { %s535_s20 = scalar_lea.vmem %s764_s28, 16  ;;  %s668_s26 = smov [#allocation2]  }
  0x26   : > { %p536_p3 = scmp.ne.s32.totalorder %s764_s28, %s535_s20  ;;  %s540_s27 = sshll.u32 %s668_s26, 4  ;;  %s541_s27 = int_to_ptr.vmem [resolvable:$false] %s540_s27 }
  0x27   : > { %s542_s29 = scalar_lea.vmem %s541_s27, 32  ;;  %p543_p9 = scmp.lt.s32.totalorder %s764_s28, %s541_s27 }
  0x28   : > { %p538_p6 = pnand %p536_p3, %p522_p5  ;;  %p544_p4 = scmp.lt.s32.totalorder %s542_s29, %s535_s20 }
  0x2a   : > { %p539_p11 = pneg %p538_p6  ;;  %p545_p10 = por %p544_p4, %p543_p9 }
  0x2c   : > { %p546_p12 = pnand %p545_p10, %p539_p11 }
  0x2e   : > { %549 = shalt.err (!%p546_p12)
}
  0x2f   : > { %454 = dma.hbm_to_vmem [thread:$0]  (!%p768_p0), %s762_s3, 16, %s764_s28, %s134_s6  }
  0x30   : > { %p926_p1 = scmp.lt.s32.totalorder %s666_s14, 3  ;;  %p927_p2 = scmp.ge.s32.totalorder %s666_s14, 1 }
  0x31   : > { %s427_s7 = sshll.u32 %s662_s13, 9  ;;  %s155_s8 = scalar_lea.vmem [#allocation5], %s412_s5 }
  0x32   : > { %p805_p7 = pnand %p927_p2, %p926_p1  ;;  %s162_s15 = sshll.u32 %s155_s8, 4  ;;  %s817_s15 = int_to_ptr.vmem [resolvable:$true] %s162_s15 }
  0x33   : > { %s815_s19 = scalar_lea.hbm %s917_s1, %s427_s7  ;;  %s152_s28 = scalar_lea.sflag [#allocation6], %s755_s25 }
  0x34   : > { %s550_s3 = scalar_lea.hbm %s815_s19, 512  ;;  %s555_s20 = scalar_lea.hbm %s917_s1, 1024 }
  0x35   : > { %p551_p9 = scmp.ne.s32.totalorder %s815_s19, %s550_s3  ;;  %p556_p3 = scmp.lt.u32.totalorder %s815_s19, %s917_s1 }
  0x36   : > { %p557_p6 = scmp.lt.u32.totalorder %s555_s20, %s550_s3  ;;  %p559_p10 = scmp.lt.u32.totalorder %s550_s3, %s815_s19 }
  0x37   : > { %p553_p11 = pnand %p551_p9, %p522_p5 }
  0x38   : > { %p558_p4 = por %p557_p6, %p556_p3 }
  0x39   : > { %p554_p13 = pneg %p553_p11 }
  0x3a   : > { %p560_p12 = por %p559_p10, %p558_p4 }
  0x3c   : > { %p561_p1 = pnand %p560_p12, %p554_p13 }
  0x3e   : > { %564 = shalt.err (!%p561_p1)
}
  0x3f   : > { %s565_s29 = scalar_lea.vmem %s817_s15, 512  ;;  %s669_s7 = smov [#allocation5]  }
  0x40   : > { %p566_p2 = scmp.ne.s32.totalorder %s817_s15, %s565_s29  ;;  %s570_s8 = sshll.u32 %s669_s7, 4  ;;  %s571_s8 = int_to_ptr.vmem [resolvable:$false] %s570_s8 }
  0x41   : > { %s572_s16 = scalar_lea.vmem %s571_s8, 1024  ;;  %p573_p8 = scmp.lt.s32.totalorder %s817_s15, %s571_s8 }
  0x42   : > { %p568_p9 = pnand %p566_p2, %p522_p5  ;;  %p574_p3 = scmp.lt.s32.totalorder %s572_s16, %s565_s29 }
  0x44   : > { %p569_p11 = pneg %p568_p9  ;;  %p575_p6 = por %p574_p3, %p573_p8 }
  0x46   : > { %p576_p4 = pnand %p575_p6, %p569_p11 }
  0x48   : > { %579 = shalt.err (!%p576_p4)
}
  0x49   : > { %s670_s18 = smov 64   ;;  %s671_s3 = smov 4  }
  0x4a   : > { %457 = dma.hbm_to_vmem [thread:$0]  (!%p768_p0), %s815_s19, 512, %s817_s15, %s152_s28, %s670_s18, %s670_s18, %s671_s3  }
  0x4b   : > { %174 = sbr.rel (%p805_p7) target bundleno = 330 (0x14a), region = 28  ;;  %s848_s5 = sand.u32 (!%p805_p7), 1, %s650_s10  }
  0x4c   : > { %s177_s6 = scalar_lea.sflag (!%p805_p7), [#allocation3], %s848_s5  ;;  %s179_s20 = scalar_lea.vmem (!%p805_p7), [#allocation2], %s848_s5 }
  0x4d   : > { %p929_p8 = scmp.ne.s32.totalorder (!%p805_p7), %s922_s21, 0 }
  0x52   : > { %633 = dma.done.wait (%p929_p8), %s177_s6, 16  }
  0x53   : > { %635 = vsyncadd (%p929_p8), %s177_s6, 4294967280  ;;  %s416_s25 = sshll.u32 %s848_s5, 5  ;;  %s185_s4 = scalar_lea.sflag [#allocation6], %s848_s5 }
  0x54   : > { %s188_s30 = scalar_lea.vmem [#allocation5], %s416_s25 }
  0x55   : > { %637 = dma.done.wait (%p929_p8), %s185_s4, 512  }
  0x56   : > { %639 = vsyncadd (%p929_p8), %s185_s4, 4294966784  ;;  %v672_v0 = vmov 0.0   ;;  %vm673_vm0 = vmmov 0   ;;  %v516_v1 = vld [vmem:[%s188_s30] sm:$0xff]   ;;  %v517_v2 = vld [vmem:[%s188_s30 + $0x8] sm:$0xff]   ;;  %vm247_vm1 = vcmask 523264  }
  0x57   : > { %433 = vmatprep.subr.bf16.mxu0 %v672_v0  ;;  %441 = vmatprep.mubr.msk.bf16.mxu0 %vm673_vm0, %v672_v0  ;;  %v518_v3 = vld [vmem:[%s188_s30 + $0x10] sm:$0xff]   ;;  %v519_v4 = vld [vmem:[%s188_s30 + $0x18] sm:$0xff]   ;;  %s417_s21 = sshll.u32 %s848_s5, 1  ;;  %s424_s28 = sshll.u32 %s658_s12, 5 }
  0x58   : > { %434 = vmatpush3.bf16.msra.mxu0 %v516_v1  ;;  %v214_v5 = vld [vmem:[%s179_s20] sm:$0x1]  ;;  %s212_s15 = scalar_lea.vmem [#allocation7], %s417_s21  ;;  %s869_s29 = scalar_lea.hbm %s918_s2, %s424_s28 }
  0x59   : > { %435 = vmatprep.subr.bf16.mxu0 %v672_v0  ;;  %s307_s19 = sshll.u32 %s212_s15, 4  ;;  %s293_s7 = scalar_lea.sflag [#allocation4], %s848_s5  ;;  %s864_s19 = int_to_ptr.vmem [resolvable:$true] %s307_s19 }
  0x5a   : > { %s580_s8 = scalar_lea.vmem %s864_s19, 32  ;;  %p930_p5 = scmp.ne.s32.totalorder %s923_s22, 0 }
  0x5b   : > { %p581_p0 = scmp.ne.s32.totalorder %s864_s19, %s580_s8  ;;  %s674_s12 = smov [#allocation7]  }
  0x5c   : > { %436 = vmatpush3.bf16.msra.mxu0 %v517_v2  ;;  %s584_s16 = sshll.u32 %s674_s12, 4  ;;  %s585_s16 = int_to_ptr.vmem [resolvable:$false] %s584_s16 }
  0x5d   : > { %437 = vmatprep.subr.bf16.mxu0 %v672_v0  ;;  %p582_p7 = pnand %p581_p0, %p930_p5  ;;  %s586_s18 = scalar_lea.vmem %s585_s16, 64 }
  0x5e   : > { %p587_p10 = scmp.lt.s32.totalorder %s864_s19, %s585_s16  ;;  %p588_p12 = scmp.lt.s32.totalorder %s586_s18, %s580_s8 }
  0x5f   : > { %p583_p13 = pneg %p582_p7 }
  0x60   : > { %438 = vmatpush3.bf16.msra.mxu0 %v518_v3  ;;  %p589_p1 = por %p588_p12, %p587_p10 }
  0x61   : > { %439 = vmatprep.subr.bf16.mxu0 %v672_v0 }
  0x62   : > { %p590_p2 = pnand %p589_p1, %p583_p13 }
  0x64   : > { %440 = vmatpush3.bf16.msra.mxu0 %v519_v4 }
  0x67   : > { %442 = vmatmul.mubr.msk.bf16.vlgmr.msra.gmra.mrb[0].mxu0 %vm247_vm1, %v214_v5 }
 0x13a   : > { %v285_v6 = vpop.f32.mrb[0].mxu0 }
 0x13b   : > { %291 = vst [vmem:[%s212_s15] sm:$0x3] %v285_v6  ;;  %v443_v7 = vpop.f32.mrb[1].mxu0 }
 0x13c   : > { %v288_v8 = vpop.f32.mrb[2].mxu0 }
 0x13d   : > { %593 = shalt.err (!%p590_p2)
}
 0x13e   : > { %s594_s3 = scalar_lea.hbm %s869_s29, 32  ;;  %s598_s20 = scalar_lea.hbm %s918_s2, 64 }
 0x13f   : > { %p595_p9 = scmp.ne.s32.totalorder %s869_s29, %s594_s3  ;;  %p599_p6 = scmp.lt.u32.totalorder %s869_s29, %s918_s2 }
 0x140   : > { %p600_p4 = scmp.lt.u32.totalorder %s598_s20, %s594_s3  ;;  %p602_p0 = scmp.lt.u32.totalorder %s594_s3, %s869_s29 }
 0x141   : > { %p596_p11 = pnand %p595_p9, %p930_p5 }
 0x142   : > { %p601_p8 = por %p600_p4, %p599_p6 }
 0x143   : > { %p597_p3 = pneg %p596_p11 }
 0x144   : > { %p603_p7 = por %p602_p0, %p601_p8 }
 0x146   : > { %p604_p13 = pnand %p603_p7, %p597_p3 }
 0x148   : > { %607 = shalt.err (!%p604_p13)
}
 0x149   : > { %449 = dma.vmem_to_hbm [thread:$0]  (%p930_p5), %s864_s19, 32, %s869_s29, %s293_s7   ;;  %v444_v9 = vpop.f32.mrb[3].mxu0 }
 0x14a PF: > { %s319_s30 = sand.u32 1, %s646_s9   ;;  %p931_p10 = scmp.ne.s32.totalorder %s924_s24, 0 }
 0x14b   : > { %p932_p12 = scmp.ge.s32.totalorder %s666_s14, 2  ;;  %s320_s21 = scalar_lea.sflag [#allocation4], %s319_s30 }
 0x14d   : > { %p459_p1 = pnand %p932_p12, %p931_p10 }
 0x14f   : > { %641 = dma.done.wait (!%p459_p1), %s320_s21, 32  }
 0x150   : > { %643 = vsyncadd (!%p459_p1), %s320_s21, 4294967264  ;;  %s21_s14 = sadd.s32 1, %s666_s14   ;;  %s933_s9 = smov %s650_s10 }
 0x151   : > { %p18_p2 = scmp.ge.s32.totalorder %s21_s14, 4   ;;  %s934_s10 = smov %s654_s11 }
 0x152   : > { %s935_s11 = smov %s746_s23  ;;  %s936_s12 = smov %s662_s13 }
 0x153   : > { %s937_s13 = smov %s939_s17  ;;  %20 = sbr.rel (!%p18_p2) target bundleno = 8 (0x8), region = 86 }
 0x15a   :  { %325 = vsyncpa [#allocation3], 1 }
 0x15b   :  { %327 = vsyncpa [#allocation3 + $0x1], 1 }
 0x15c   :  { %328 = vsyncpa [#allocation6], 1 }
 0x15d   :  { %330 = vsyncpa [#allocation6 + $0x1], 1 }
 0x15e   :  { %331 = vsyncpa [#allocation4], 1 }
 0x15f   :  { %333 = vsyncpa [#allocation4 + $0x1], 1 }

</bundles_post_ra>
